<compile_context>
chip_gen: v7x
topology: tpu7x:2x2x1
jax: 0.10.0
libtpu: 0.0.40
codegen_flags: <defaults>
</compile_context>

<pallas_src>
import functools

import numpy as np
import jax
import jax.numpy as jnp
from jax.experimental import pallas as pl
from jax.experimental.pallas import tpu as pltpu


# ----------------------------- Pallas kernel ------------------------------ #
def _masking_kernel(starts_ref, ends_ref, counts_ref, sig_ref, out_ref,
                    mask_scratch, *, mask_value, max_intervals, bt, ts):
    """Apply random-masking windows to a (bt, lead, ts) block.

    starts_ref / ends_ref : SMEM int32 (batch*max_intervals,), half-open
                            intervals [start, end) packed row-major per batch.
    counts_ref            : SMEM int32 (batch,) number of valid intervals.
    sig_ref / out_ref     : VMEM (bt, lead, ts) block.
    mask_scratch          : VMEM (bt, 1, ts) mask rows in the signal dtype,
                            holding {1, mask_value}.
    """
    tile_b = pl.program_id(0)
    tile_t = pl.program_id(1)

    # Global time index along the lane axis (time-only row; no lead broadcast).
    t0 = tile_t * ts
    t = t0 + jax.lax.broadcasted_iota(jnp.int32, (1, ts), 1)

    mask_scratch[...] = jnp.ones(mask_scratch.shape, dtype=mask_scratch.dtype)
    mv = jnp.asarray(mask_value, dtype=mask_scratch.dtype)

    # Static unroll over the (small, capped) number of batch rows in this tile.
    for bl in range(bt):
        b = tile_b * bt + bl
        count = counts_ref[b]
        off = b * max_intervals

        # Dynamic trip count: only the intervals that actually exist.
        @pl.loop(0, count)
        def _body(k):
            s = starts_ref[off + k]
            e = ends_ref[off + k]

            # Scalar guard: skip intervals outside this time tile entirely.
            @pl.when((e > t0) & (s < t0 + ts))
            def _():
                in_win = (t >= s) & (t < e)
                # Idempotent write of mask_value inside the window.
                mask_scratch[bl] = jnp.where(in_win, mv, mask_scratch[bl])

    # Single implicit-broadcast multiply: (bt, lead, ts) * (bt, 1, ts).
    # Multiply form (not a plain fill) so NaN/Inf propagation matches sig*mask.
    out_ref[...] = sig_ref[...] * mask_scratch[...]


# --------------------------- tiling / sizing ------------------------------ #
def _tpu_plan():
    """Per-generation VMEM footprint budget / scoped limit / TC count."""
    kind = ""
    try:
        kind = jax.devices()[0].device_kind.lower()
    except Exception:
        pass
    if "v7" in kind or "7x" in kind:
        # 64 MiB physical VMEM, 2 TensorCores per chip sharing HBM.
        return {"footprint_budget": 36 << 20, "vmem_limit": 48 << 20, "num_tc": 2}
    if any(tag in kind for tag in ("v4", "v5", "v6")):
        # 128 MiB physical VMEM, single TensorCore (megacore handled by XLA).
        return {"footprint_budget": 72 << 20, "vmem_limit": 96 << 20, "num_tc": 1}
    # Unknown chip: stay under the default scoped-VMEM limit, don't override it.
    return {"footprint_budget": 10 << 20, "vmem_limit": None, "num_tc": 1}


def _plan_time_tiling(siglen, max_ts=16384):
    """Pick (time_tile, padded_siglen).

    Small signals use the whole axis (no (8,128) constraint when the block
    equals the full dim).  Long signals are padded to a multiple of 128 so a
    multiple-of-128 tile always exists."""
    if siglen <= max_ts:
        return siglen, siglen
    padded = ((siglen + 127) // 128) * 128
    for ts in range(max_ts - max_ts % 128, 127, -128):
        if padded % ts == 0:
            return ts, padded
    return 128, padded  # unreachable: 128 always divides `padded`


def _pick_batch_tile(batch, lead, ts, itemsize, footprint_budget, num_tc,
                     max_rows=8):
    """Batch rows per block, sized against the per-generation VMEM budget.

    Accounts for the lead -> multiple-of-8 sublane padding of the (lead, ts)
    tile, double-buffered in + out blocks, and the (bt, 1->8, ts) mask scratch.
    On 2-TC chips, keeps >= 2 grid steps along the 'parallel' batch axis."""
    padded_lead = -(-lead // 8) * 8
    per_b = (4 * padded_lead + 8) * ts * itemsize
    bt = max(1, min(batch, max_rows, footprint_budget // max(per_b, 1)))
    if num_tc >= 2 and batch >= 2:
        bt = min(bt, (batch + 1) // 2)
    while batch % bt != 0:                    # avoid ragged batch blocks
        bt -= 1
    return int(bt)


def random_masking_apply(sig, starts, ends, counts, max_intervals,
                         mask_value=0.0, batch_tile=None, time_tile=None):
    """sig: (batch, lead, siglen); starts/ends: (batch*max_intervals,) int32
    flattened interval tables; counts: (batch,) int32 valid-interval counts."""
    batch, lead, siglen = sig.shape
    plan = _tpu_plan()

    if time_tile is not None:
        ts, padded = int(time_tile), siglen
        assert siglen % ts == 0
    else:
        ts, padded = _plan_time_tiling(siglen)

    sig_in = sig
    if padded != siglen:
        sig_in = jnp.pad(sig, ((0, 0), (0, 0), (0, padded - siglen)))

    itemsize = sig.dtype.itemsize
    bt = batch_tile if batch_tile is not None else _pick_batch_tile(
        batch, lead, ts, itemsize, plan["footprint_budget"], plan["num_tc"])
    assert padded % ts == 0 and batch % bt == 0
    grid = (batch // bt, padded // ts)

    kernel = functools.partial(_masking_kernel, mask_value=float(mask_value),
                               max_intervals=int(max_intervals), bt=bt, ts=ts)

    grid_spec = pltpu.PrefetchScalarGridSpec(
        num_scalar_prefetch=3,                # starts, ends, counts -> SMEM
        grid=grid,
        in_specs=[pl.BlockSpec((bt, lead, ts), lambda i, j, s, e, c: (i, 0, j))],
        out_specs=pl.BlockSpec((bt, lead, ts), lambda i, j, s, e, c: (i, 0, j)),
        scratch_shapes=[pltpu.VMEM((bt, 1, ts), sig.dtype)],
    )

    cp_kwargs = {"dimension_semantics": ("parallel", "parallel")}
    if plan["vmem_limit"] is not None:
        cp_kwargs["vmem_limit_bytes"] = int(plan["vmem_limit"])

    nbytes = batch * lead * padded * itemsize
    out = pl.pallas_call(
        kernel,
        out_shape=jax.ShapeDtypeStruct((batch, lead, padded), sig.dtype),
        grid_spec=grid_spec,
        compiler_params=pltpu.CompilerParams(**cp_kwargs),
        cost_estimate=pl.CostEstimate(flops=batch * lead * padded,
                                      transcendentals=0,
                                      bytes_accessed=2 * nbytes),
    )(starts, ends, counts, sig_in)

    if padded != siglen:
        out = out[..., :siglen]
    return out


# ---------------------- host-side randomness (glue) ----------------------- #
def get_indices(rng, prob, pop_size, scale_ratio=0.1):
    """Faithful re-implementation of the module's get_indices with a seeded rng."""
    k = rng.normal(pop_size * prob, scale_ratio * pop_size)
    k = int(round(np.clip(k, 0, pop_size)))
    return rng.choice(list(range(pop_size)), k).tolist()


def make_mask_intervals(rng, batch, siglen, prob, mask_width):
    """Reproduce RandomMasking.forward's window selection (critical_points=None)
    and emit dense (batch, K) interval tables sized to the actual max count."""
    # TODO(synk): critical_points path differs only in host-side index
    # selection; the kernel applies the resulting intervals identically.
    intervals = [[] for _ in range(batch)]

    sig_mask_prob = 0.5 / mask_width[1]
    sig_mask_scale_ratio = min(prob[1] / 4, 0.1) / mask_width[1]

    for b in get_indices(rng, prob=prob[0], pop_size=batch):
        idxs = np.array(
            get_indices(rng, prob=sig_mask_prob,
                        pop_size=siglen - mask_width[1],
                        scale_ratio=sig_mask_scale_ratio),
            dtype=np.int64,
        )
        idxs = idxs + mask_width[1] // 2
        for j in idxs:
            # random.randint is inclusive on both ends
            r = int(rng.integers(mask_width[0], mask_width[1] + 1)) // 2
            s, e = int(j - r), int(j + r)
            assert 0 <= s <= e <= siglen, "invalid masking interval"
            intervals[b].append((s, e))

    max_k = max(1, max(len(v) for v in intervals))
    starts = np.zeros((batch, max_k), np.int32)
    ends = np.zeros((batch, max_k), np.int32)
    counts = np.zeros((batch,), np.int32)
    for b, ivs in enumerate(intervals):
        counts[b] = len(ivs)
        for i, (s, e) in enumerate(ivs):
            starts[b, i] = s
            ends[b, i] = e
    return starts, ends, counts, max_k


# --------------------------------- main ----------------------------------- #
if __name__ == "__main__":
    # Module config: RandomMasking(fs=100, prob=0.7) -> prob=[0.7, 0.7],
    # mask_width = round([0.08, 0.18] * fs) = [8, 18], mask_value = 0.0
    fs = 100
    mask_value = 0.0
    mask_width = np.round(np.array([0.08, 0.18]) * fs).astype(int)  # [8, 18]
    prob = np.array([0.7, 0.7])

    batch, lead, siglen = 4, 12, 256

    key = jax.random.PRNGKey(0)
    sig = jax.random.normal(key, (batch, lead, siglen), dtype=jnp.float32)
    sig_np = np.asarray(sig)

    rng = np.random.default_rng(0)
    starts_np, ends_np, counts_np, max_k = make_mask_intervals(
        rng, batch, siglen, prob, mask_width)

    starts = jnp.asarray(starts_np.reshape(-1), dtype=jnp.int32)
    ends = jnp.asarray(ends_np.reshape(-1), dtype=jnp.int32)
    counts = jnp.asarray(counts_np, dtype=jnp.int32)

    out = random_masking_apply(sig, starts, ends, counts, max_k,
                               mask_value=mask_value)
    out = jax.block_until_ready(out)

    # Pure-numpy reference of the forward pass (mask build + multiply).
    mask_ref = np.ones((batch, lead, siglen), np.float32)
    for b in range(batch):
        for i in range(int(counts_np[b])):
            s, e = int(starts_np[b, i]), int(ends_np[b, i])
            mask_ref[b, :, s:e] = mask_value
    expected = sig_np * mask_ref

    np.testing.assert_allclose(np.asarray(out), expected, rtol=0, atol=0)
    print("KERNEL_OK")
</pallas_src>

<mosaic_0001>
module attributes {stable_mosaic.version = 11 : i64} {
  func.func @_masking_kernel(%arg0: i32, %arg1: i32, %arg2: memref<60xi32, #tpu.memory_space<smem>>, %arg3: memref<60xi32, #tpu.memory_space<smem>>, %arg4: memref<4xi32, #tpu.memory_space<smem>>, %arg5: memref<4x12x256xf32, #tpu.memory_space<vmem>>, %arg6: memref<4x12x256xf32, #tpu.memory_space<vmem>>, %arg7: memref<4x1x256xf32, #tpu.memory_space<vmem>>) attributes {dimension_semantics = [#tpu.dimension_semantics<parallel>, #tpu.dimension_semantics<parallel>], iteration_bounds = array<i64: 1, 1>, scalar_prefetch = 3 : i64, scratch_operands = 1 : i64, tpu.core_type = #tpu.core_type<tc>, window_params = [{transform_indices = @transform_0, window_bounds = array<i64: 4, 12, 256>}, {transform_indices = @transform_1, window_bounds = array<i64: 4, 12, 256>}]} {
    %c256_i32 = arith.constant 256 : i32
    %0 = arith.muli %arg1, %c256_i32 : i32
    %1 = tpu.iota {dimensions = array<i32: 1>} : vector<1x256xi32>
    %2 = vector.broadcast %0 : i32 to vector<1x256xi32>
    %3 = arith.addi %2, %1 : vector<1x256xi32>
    %cst = arith.constant 1.000000e+00 : f32
    %4 = vector.broadcast %cst : f32 to vector<4x1x256xf32>
    %c0 = arith.constant 0 : index
    %c0_0 = arith.constant 0 : index
    %c0_1 = arith.constant 0 : index
    %5 = vector.load %arg7[%c0, %c0_0, %c0_1] : memref<4x1x256xf32, #tpu.memory_space<vmem>>, vector<4x1x256xf32>
    tpu.vector_store %arg7[%c0, %c0_0, %c0_1], %4 {strides = array<i32>} : memref<4x1x256xf32, #tpu.memory_space<vmem>>, vector<4x1x256xf32>,
    %c4_i32 = arith.constant 4 : i32
    %6 = arith.muli %arg0, %c4_i32 : i32
    %c0_i32 = arith.constant 0 : i32
    %7 = arith.addi %6, %c0_i32 : i32
    %8 = arith.index_cast %7 : i32 to index
    %9 = memref.load %arg4[%8] : memref<4xi32, #tpu.memory_space<smem>>
    %c15_i32 = arith.constant 15 : i32
    %10 = arith.muli %7, %c15_i32 : i32
    %c0_i32_2 = arith.constant 0 : i32
    %11 = arith.subi %9, %c0_i32_2 : i32
    %c1_i32 = arith.constant 1 : i32
    %c1_i32_3 = arith.constant 1 : i32
    %12 = arith.subi %c1_i32, %c1_i32_3 : i32
    %13 = arith.addi %11, %12 : i32
    %c1_i32_4 = arith.constant 1 : i32
    %14 = arith.divsi %13, %c1_i32_4 : i32
    %c1_i32_5 = arith.constant 1 : i32
    %c0_i32_6 = arith.constant 0 : i32
    %cst_7 = arith.constant 0.000000e+00 : f32
    %c0_i32_8 = arith.constant 0 : i32
    %15 = arith.subi %14, %c0_i32_8 : i32
    %16 = arith.addi %c0_i32_8, %15 : i32
    %c1_i32_9 = arith.constant 1 : i32
    scf.for %arg8 = %c0_i32_8 to %16 step %c1_i32_9  : i32 {
      %55 = arith.muli %arg8, %c1_i32_5 : i32
      %56 = arith.addi %c0_i32_6, %55 : i32
      %57 = arith.addi %10, %56 : i32
      %58 = arith.index_cast %57 : i32 to index
      %59 = memref.load %arg2[%58] : memref<60xi32, #tpu.memory_space<smem>>
      %60 = arith.addi %10, %56 : i32
      %61 = arith.index_cast %60 : i32 to index
      %62 = memref.load %arg3[%61] : memref<60xi32, #tpu.memory_space<smem>>
      %63 = arith.cmpi sgt, %62, %0 : i32
      %c256_i32_53 = arith.constant 256 : i32
      %64 = arith.addi %0, %c256_i32_53 : i32
      %65 = arith.cmpi slt, %59, %64 : i32
      %66 = arith.andi %63, %65 : i1
      %67 = arith.extui %66 : i1 to i32
      %c0_i32_54 = arith.constant 0 : i32
      %68 = arith.cmpi ne, %67, %c0_i32_54 : i32
      scf.if %68 {
        %69 = vector.broadcast %59 : i32 to vector<1x256xi32>
        %70 = arith.cmpi sge, %3, %69 : vector<1x256xi32>
        %71 = vector.broadcast %62 : i32 to vector<1x256xi32>
        %72 = arith.cmpi slt, %3, %71 : vector<1x256xi32>
        %73 = arith.andi %70, %72 : vector<1x256xi1>
        %c0_55 = arith.constant 0 : index
        %c0_56 = arith.constant 0 : index
        %c0_57 = arith.constant 0 : index
        %74 = vector.load %arg7[%c0_55, %c0_56, %c0_57] : memref<4x1x256xf32, #tpu.memory_space<vmem>>, vector<1x1x256xf32>
        %75 = vector.shape_cast %74 : vector<1x1x256xf32> to vector<1x256xf32>
        %76 = vector.broadcast %cst_7 : f32 to vector<1x256xf32>
        %77 = arith.select %73, %76, %75 : vector<1x256xi1>, vector<1x256xf32>
        %c0_58 = arith.constant 0 : index
        %c0_59 = arith.constant 0 : index
        %c0_60 = arith.constant 0 : index
        %78 = vector.load %arg7[%c0_58, %c0_59, %c0_60] : memref<4x1x256xf32, #tpu.memory_space<vmem>>, vector<1x1x256xf32>
        %79 = vector.shape_cast %78 : vector<1x1x256xf32> to vector<1x256xf32>
        %80 = vector.shape_cast %77 : vector<1x256xf32> to vector<1x1x256xf32>
        tpu.vector_store %arg7[%c0_58, %c0_59, %c0_60], %80 {strides = array<i32>} : memref<4x1x256xf32, #tpu.memory_space<vmem>>, vector<1x1x256xf32>,
      } else {
      }
    }
    %c4_i32_10 = arith.constant 4 : i32
    %17 = arith.muli %arg0, %c4_i32_10 : i32
    %c1_i32_11 = arith.constant 1 : i32
    %18 = arith.addi %17, %c1_i32_11 : i32
    %19 = arith.index_cast %18 : i32 to index
    %20 = memref.load %arg4[%19] : memref<4xi32, #tpu.memory_space<smem>>
    %c15_i32_12 = arith.constant 15 : i32
    %21 = arith.muli %18, %c15_i32_12 : i32
    %c0_i32_13 = arith.constant 0 : i32
    %22 = arith.subi %20, %c0_i32_13 : i32
    %c1_i32_14 = arith.constant 1 : i32
    %c1_i32_15 = arith.constant 1 : i32
    %23 = arith.subi %c1_i32_14, %c1_i32_15 : i32
    %24 = arith.addi %22, %23 : i32
    %c1_i32_16 = arith.constant 1 : i32
    %25 = arith.divsi %24, %c1_i32_16 : i32
    %c1_i32_17 = arith.constant 1 : i32
    %c0_i32_18 = arith.constant 0 : i32
    %cst_19 = arith.constant 0.000000e+00 : f32
    %c0_i32_20 = arith.constant 0 : i32
    %26 = arith.subi %25, %c0_i32_20 : i32
    %27 = arith.addi %c0_i32_20, %26 : i32
    %c1_i32_21 = arith.constant 1 : i32
    scf.for %arg8 = %c0_i32_20 to %27 step %c1_i32_21  : i32 {
      %55 = arith.muli %arg8, %c1_i32_17 : i32
      %56 = arith.addi %c0_i32_18, %55 : i32
      %57 = arith.addi %21, %56 : i32
      %58 = arith.index_cast %57 : i32 to index
      %59 = memref.load %arg2[%58] : memref<60xi32, #tpu.memory_space<smem>>
      %60 = arith.addi %21, %56 : i32
      %61 = arith.index_cast %60 : i32 to index
      %62 = memref.load %arg3[%61] : memref<60xi32, #tpu.memory_space<smem>>
      %63 = arith.cmpi sgt, %62, %0 : i32
      %c256_i32_53 = arith.constant 256 : i32
      %64 = arith.addi %0, %c256_i32_53 : i32
      %65 = arith.cmpi slt, %59, %64 : i32
      %66 = arith.andi %63, %65 : i1
      %67 = arith.extui %66 : i1 to i32
      %c0_i32_54 = arith.constant 0 : i32
      %68 = arith.cmpi ne, %67, %c0_i32_54 : i32
      scf.if %68 {
        %69 = vector.broadcast %59 : i32 to vector<1x256xi32>
        %70 = arith.cmpi sge, %3, %69 : vector<1x256xi32>
        %71 = vector.broadcast %62 : i32 to vector<1x256xi32>
        %72 = arith.cmpi slt, %3, %71 : vector<1x256xi32>
        %73 = arith.andi %70, %72 : vector<1x256xi1>
        %c1 = arith.constant 1 : index
        %c0_55 = arith.constant 0 : index
        %c0_56 = arith.constant 0 : index
        %74 = vector.load %arg7[%c1, %c0_55, %c0_56] : memref<4x1x256xf32, #tpu.memory_space<vmem>>, vector<1x1x256xf32>
        %75 = vector.shape_cast %74 : vector<1x1x256xf32> to vector<1x256xf32>
        %76 = vector.broadcast %cst_19 : f32 to vector<1x256xf32>
        %77 = arith.select %73, %76, %75 : vector<1x256xi1>, vector<1x256xf32>
        %c1_57 = arith.constant 1 : index
        %c0_58 = arith.constant 0 : index
        %c0_59 = arith.constant 0 : index
        %78 = vector.load %arg7[%c1_57, %c0_58, %c0_59] : memref<4x1x256xf32, #tpu.memory_space<vmem>>, vector<1x1x256xf32>
        %79 = vector.shape_cast %78 : vector<1x1x256xf32> to vector<1x256xf32>
        %80 = vector.shape_cast %77 : vector<1x256xf32> to vector<1x1x256xf32>
        tpu.vector_store %arg7[%c1_57, %c0_58, %c0_59], %80 {strides = array<i32>} : memref<4x1x256xf32, #tpu.memory_space<vmem>>, vector<1x1x256xf32>,
      } else {
      }
    }
    %c4_i32_22 = arith.constant 4 : i32
    %28 = arith.muli %arg0, %c4_i32_22 : i32
    %c2_i32 = arith.constant 2 : i32
    %29 = arith.addi %28, %c2_i32 : i32
    %30 = arith.index_cast %29 : i32 to index
    %31 = memref.load %arg4[%30] : memref<4xi32, #tpu.memory_space<smem>>
    %c15_i32_23 = arith.constant 15 : i32
    %32 = arith.muli %29, %c15_i32_23 : i32
    %c0_i32_24 = arith.constant 0 : i32
    %33 = arith.subi %31, %c0_i32_24 : i32
    %c1_i32_25 = arith.constant 1 : i32
    %c1_i32_26 = arith.constant 1 : i32
    %34 = arith.subi %c1_i32_25, %c1_i32_26 : i32
    %35 = arith.addi %33, %34 : i32
    %c1_i32_27 = arith.constant 1 : i32
    %36 = arith.divsi %35, %c1_i32_27 : i32
    %c1_i32_28 = arith.constant 1 : i32
    %c0_i32_29 = arith.constant 0 : i32
    %cst_30 = arith.constant 0.000000e+00 : f32
    %c0_i32_31 = arith.constant 0 : i32
    %37 = arith.subi %36, %c0_i32_31 : i32
    %38 = arith.addi %c0_i32_31, %37 : i32
    %c1_i32_32 = arith.constant 1 : i32
    scf.for %arg8 = %c0_i32_31 to %38 step %c1_i32_32  : i32 {
      %55 = arith.muli %arg8, %c1_i32_28 : i32
      %56 = arith.addi %c0_i32_29, %55 : i32
      %57 = arith.addi %32, %56 : i32
      %58 = arith.index_cast %57 : i32 to index
      %59 = memref.load %arg2[%58] : memref<60xi32, #tpu.memory_space<smem>>
      %60 = arith.addi %32, %56 : i32
      %61 = arith.index_cast %60 : i32 to index
      %62 = memref.load %arg3[%61] : memref<60xi32, #tpu.memory_space<smem>>
      %63 = arith.cmpi sgt, %62, %0 : i32
      %c256_i32_53 = arith.constant 256 : i32
      %64 = arith.addi %0, %c256_i32_53 : i32
      %65 = arith.cmpi slt, %59, %64 : i32
      %66 = arith.andi %63, %65 : i1
      %67 = arith.extui %66 : i1 to i32
      %c0_i32_54 = arith.constant 0 : i32
      %68 = arith.cmpi ne, %67, %c0_i32_54 : i32
      scf.if %68 {
        %69 = vector.broadcast %59 : i32 to vector<1x256xi32>
        %70 = arith.cmpi sge, %3, %69 : vector<1x256xi32>
        %71 = vector.broadcast %62 : i32 to vector<1x256xi32>
        %72 = arith.cmpi slt, %3, %71 : vector<1x256xi32>
        %73 = arith.andi %70, %72 : vector<1x256xi1>
        %c2 = arith.constant 2 : index
        %c0_55 = arith.constant 0 : index
        %c0_56 = arith.constant 0 : index
        %74 = vector.load %arg7[%c2, %c0_55, %c0_56] : memref<4x1x256xf32, #tpu.memory_space<vmem>>, vector<1x1x256xf32>
        %75 = vector.shape_cast %74 : vector<1x1x256xf32> to vector<1x256xf32>
        %76 = vector.broadcast %cst_30 : f32 to vector<1x256xf32>
        %77 = arith.select %73, %76, %75 : vector<1x256xi1>, vector<1x256xf32>
        %c2_57 = arith.constant 2 : index
        %c0_58 = arith.constant 0 : index
        %c0_59 = arith.constant 0 : index
        %78 = vector.load %arg7[%c2_57, %c0_58, %c0_59] : memref<4x1x256xf32, #tpu.memory_space<vmem>>, vector<1x1x256xf32>
        %79 = vector.shape_cast %78 : vector<1x1x256xf32> to vector<1x256xf32>
        %80 = vector.shape_cast %77 : vector<1x256xf32> to vector<1x1x256xf32>
        tpu.vector_store %arg7[%c2_57, %c0_58, %c0_59], %80 {strides = array<i32>} : memref<4x1x256xf32, #tpu.memory_space<vmem>>, vector<1x1x256xf32>,
      } else {
      }
    }
    %c4_i32_33 = arith.constant 4 : i32
    %39 = arith.muli %arg0, %c4_i32_33 : i32
    %c3_i32 = arith.constant 3 : i32
    %40 = arith.addi %39, %c3_i32 : i32
    %41 = arith.index_cast %40 : i32 to index
    %42 = memref.load %arg4[%41] : memref<4xi32, #tpu.memory_space<smem>>
    %c15_i32_34 = arith.constant 15 : i32
    %43 = arith.muli %40, %c15_i32_34 : i32
    %c0_i32_35 = arith.constant 0 : i32
    %44 = arith.subi %42, %c0_i32_35 : i32
    %c1_i32_36 = arith.constant 1 : i32
    %c1_i32_37 = arith.constant 1 : i32
    %45 = arith.subi %c1_i32_36, %c1_i32_37 : i32
    %46 = arith.addi %44, %45 : i32
    %c1_i32_38 = arith.constant 1 : i32
    %47 = arith.divsi %46, %c1_i32_38 : i32
    %c1_i32_39 = arith.constant 1 : i32
    %c0_i32_40 = arith.constant 0 : i32
    %cst_41 = arith.constant 0.000000e+00 : f32
    %c0_i32_42 = arith.constant 0 : i32
    %48 = arith.subi %47, %c0_i32_42 : i32
    %49 = arith.addi %c0_i32_42, %48 : i32
    %c1_i32_43 = arith.constant 1 : i32
    scf.for %arg8 = %c0_i32_42 to %49 step %c1_i32_43  : i32 {
      %55 = arith.muli %arg8, %c1_i32_39 : i32
      %56 = arith.addi %c0_i32_40, %55 : i32
      %57 = arith.addi %43, %56 : i32
      %58 = arith.index_cast %57 : i32 to index
      %59 = memref.load %arg2[%58] : memref<60xi32, #tpu.memory_space<smem>>
      %60 = arith.addi %43, %56 : i32
      %61 = arith.index_cast %60 : i32 to index
      %62 = memref.load %arg3[%61] : memref<60xi32, #tpu.memory_space<smem>>
      %63 = arith.cmpi sgt, %62, %0 : i32
      %c256_i32_53 = arith.constant 256 : i32
      %64 = arith.addi %0, %c256_i32_53 : i32
      %65 = arith.cmpi slt, %59, %64 : i32
      %66 = arith.andi %63, %65 : i1
      %67 = arith.extui %66 : i1 to i32
      %c0_i32_54 = arith.constant 0 : i32
      %68 = arith.cmpi ne, %67, %c0_i32_54 : i32
      scf.if %68 {
        %69 = vector.broadcast %59 : i32 to vector<1x256xi32>
        %70 = arith.cmpi sge, %3, %69 : vector<1x256xi32>
        %71 = vector.broadcast %62 : i32 to vector<1x256xi32>
        %72 = arith.cmpi slt, %3, %71 : vector<1x256xi32>
        %73 = arith.andi %70, %72 : vector<1x256xi1>
        %c3 = arith.constant 3 : index
        %c0_55 = arith.constant 0 : index
        %c0_56 = arith.constant 0 : index
        %74 = vector.load %arg7[%c3, %c0_55, %c0_56] : memref<4x1x256xf32, #tpu.memory_space<vmem>>, vector<1x1x256xf32>
        %75 = vector.shape_cast %74 : vector<1x1x256xf32> to vector<1x256xf32>
        %76 = vector.broadcast %cst_41 : f32 to vector<1x256xf32>
        %77 = arith.select %73, %76, %75 : vector<1x256xi1>, vector<1x256xf32>
        %c3_57 = arith.constant 3 : index
        %c0_58 = arith.constant 0 : index
        %c0_59 = arith.constant 0 : index
        %78 = vector.load %arg7[%c3_57, %c0_58, %c0_59] : memref<4x1x256xf32, #tpu.memory_space<vmem>>, vector<1x1x256xf32>
        %79 = vector.shape_cast %78 : vector<1x1x256xf32> to vector<1x256xf32>
        %80 = vector.shape_cast %77 : vector<1x256xf32> to vector<1x1x256xf32>
        tpu.vector_store %arg7[%c3_57, %c0_58, %c0_59], %80 {strides = array<i32>} : memref<4x1x256xf32, #tpu.memory_space<vmem>>, vector<1x1x256xf32>,
      } else {
      }
    }
    %c0_44 = arith.constant 0 : index
    %c0_45 = arith.constant 0 : index
    %c0_46 = arith.constant 0 : index
    %50 = vector.load %arg5[%c0_44, %c0_45, %c0_46] : memref<4x12x256xf32, #tpu.memory_space<vmem>>, vector<4x12x256xf32>
    %c0_47 = arith.constant 0 : index
    %c0_48 = arith.constant 0 : index
    %c0_49 = arith.constant 0 : index
    %51 = vector.load %arg7[%c0_47, %c0_48, %c0_49] : memref<4x1x256xf32, #tpu.memory_space<vmem>>, vector<4x1x256xf32>
    %52 = vector.broadcast %51 : vector<4x1x256xf32> to vector<4x12x256xf32>
    %53 = arith.mulf %50, %52 : vector<4x12x256xf32>
    %c0_50 = arith.constant 0 : index
    %c0_51 = arith.constant 0 : index
    %c0_52 = arith.constant 0 : index
    %54 = vector.load %arg6[%c0_50, %c0_51, %c0_52] : memref<4x12x256xf32, #tpu.memory_space<vmem>>, vector<4x12x256xf32>
    tpu.vector_store %arg6[%c0_50, %c0_51, %c0_52], %53 {strides = array<i32>} : memref<4x12x256xf32, #tpu.memory_space<vmem>>, vector<4x12x256xf32>,
    return
  }
  func.func @transform_0(%arg0: i32, %arg1: i32, %arg2: memref<60xi32, #tpu.memory_space<smem>>, %arg3: memref<60xi32, #tpu.memory_space<smem>>, %arg4: memref<4xi32, #tpu.memory_space<smem>>) -> (i32, i32, i32) {
    %c0_i32 = arith.constant 0 : i32
    %c0_i32_0 = arith.constant 0 : i32
    return %arg0, %c0_i32, %arg1 : i32, i32, i32
  }
  func.func @transform_1(%arg0: i32, %arg1: i32, %arg2: memref<60xi32, #tpu.memory_space<smem>>, %arg3: memref<60xi32, #tpu.memory_space<smem>>, %arg4: memref<4xi32, #tpu.memory_space<smem>>) -> (i32, i32, i32) {
    %c0_i32 = arith.constant 0 : i32
    %c0_i32_0 = arith.constant 0 : i32
    return %arg0, %c0_i32, %arg1 : i32, i32, i32
  }
}

</mosaic_0001>

<bundles_post_ra>
// kernel: tpu_custom_call.1
= control target key start
LH: loop header
LB: loop body
LE: loop exit
PB: predicated region body
PF: predicated region fallthrough
CT: control target
= control target key end

     0   :  { %s759_s0 = inlined_call_operand.vmem [shape: s32[60], index: 0, kind: input, shape index: {}]   ;;  %s760_s3 = inlined_call_operand.vmem [shape: f32[4,12,256], index: 3, kind: input, shape index: {}]   ;;  %s761_s4 = inlined_call_operand.vmem [shape: f32[4,12,256], index: 4, kind: output, shape index: {}]   ;;  %s762_s1 = inlined_call_operand.vmem [shape: s32[60], index: 1, kind: input, shape index: {}]   ;;  %s763_s2 = inlined_call_operand.vmem [shape: s32[4], index: 2, kind: input, shape index: {}]  }
   0x1   :  { %s9_s17 = sshll.u32 %s759_s0, 4  ;;  %s13_s20 = sshll.u32 %s762_s1, 4  ;;  %s10_s17 = int_to_ptr.vmem [resolvable:$true] %s9_s17  ;;  %s14_s20 = int_to_ptr.vmem [resolvable:$true] %s13_s20 }
   0x2   :  { %s450_s21 = scalar_lea.vmem %s10_s17, 16  ;;  %p455_p1 = scmp.lt.s32.totalorder %s10_s17, %s10_s17 }
   0x3   :  { %p451_p0 = scmp.ne.s32.totalorder %s10_s17, %s450_s21  ;;  %p456_p2 = scmp.lt.s32.totalorder %s450_s21, %s450_s21 }
   0x5   :  { %p457_p3 = por %p456_p2, %p455_p1 }
   0x7   :  { %p458_p4 = pnand %p457_p3, %p451_p0 }
   0x9   :  { %461 = shalt.err (!%p458_p4)  }
   0xa   :  { %s520_s22 = smov [#allocation4]   ;;  %s462_s23 = scalar_lea.vmem %s14_s20, 16 }
   0xb   :  { %12 = dma.vmem_to_smem %s10_s17, 16, %s520_s22, [#allocation3] }
   0xc   :  { %p463_p5 = scmp.ne.s32.totalorder %s14_s20, %s462_s23  ;;  %p467_p6 = scmp.lt.s32.totalorder %s14_s20, %s14_s20 }
   0xd   :  { %p468_p7 = scmp.lt.s32.totalorder %s462_s23, %s462_s23 }
   0xf   :  { %p469_p8 = por %p468_p7, %p467_p6 }
  0x11   :  { %p470_p9 = pnand %p469_p8, %p463_p5 }
  0x13   :  { %473 = shalt.err (!%p470_p9)  }
  0x14   :  { %s521_s0 = smov [#allocation5]   ;;  %s17_s25 = sshll.u32 %s763_s2, 4  ;;  %s18_s25 = int_to_ptr.vmem [resolvable:$true] %s17_s25 }
  0x15   :  { %16 = dma.vmem_to_smem %s14_s20, 16, %s521_s0, [#allocation3] }
  0x16   :  { %s474_s26 = scalar_lea.vmem %s18_s25, 16  ;;  %p479_p11 = scmp.lt.s32.totalorder %s18_s25, %s18_s25 }
  0x17   :  { %p475_p10 = scmp.ne.s32.totalorder %s18_s25, %s474_s26  ;;  %p480_p12 = scmp.lt.s32.totalorder %s474_s26, %s474_s26 }
  0x19   :  { %p481_p13 = por %p480_p12, %p479_p11 }
  0x1b   :  { %p482_p0 = pnand %p481_p13, %p475_p10 }
  0x1d   :  { %485 = shalt.err (!%p482_p0)  }
  0x1e   :  { %s522_s27 = smov [#allocation6]  }
  0x1f   :  { %20 = dma.vmem_to_smem %s18_s25, 16, %s522_s27, [#allocation3] }
  0x20   :  { %502 = dma.done.wait [#allocation3], 48 }
  0x21   :  { %503 = vsyncadd [#allocation3], 4294967248 }
  0x22   :  { %22 = sfence }
  0x23   :  { %v26_v0 = vlaneseq  ;;  %s562_s28 = sld [smem:[#allocation6]]  ;;  %v523_v3 = vmov 1.0  }
  0x25   :  { %v565_v1 = vand.u32 127, %v26_v0  ;;  %vm568_vm0 = vcmp.lt.s32.totalorder %v26_v0, 256 }
  0x26   :  { %36 = vst.msk [vmem:[#allocation2] sm:$0x3] %vm568_vm0, %v523_v3  ;;  %37 = vst.msk [vmem:[#allocation2 + $0x2] sm:$0x3] %vm568_vm0, %v523_v3 }
  0x27   :  { %38 = vst.msk [vmem:[#allocation2 + $0x4] sm:$0x3] %vm568_vm0, %v523_v3  ;;  %39 = vst.msk [vmem:[#allocation2 + $0x6] sm:$0x3] %vm568_vm0, %v523_v3  ;;  %v581_v4 = vadd.s32 128, %v565_v1 }
  0x29   :  { %p403_p1 = scmp.le.s32.totalorder %s562_s28, 0 }
  0x2a   :  { %s584_s2 = smov (!%p403_p1), 0  }
  0x2b   :  { %385 = sbr.rel (%p403_p1) target bundleno = 84 (0x54), region = 65 }
  0x32 LB: > { %s50_s29 = sld [smem:[#allocation4 + %s506_s2]]  ;;  %s506_s2 = sphi %s584_s2, %s46_s2  }
  0x33   : > { %s51_s30 = sld [smem:[#allocation5 + %s506_s2]] }
  0x38   : > { %p54_p3 = scmp.lt.s32.totalorder %s50_s29, 256 }
  0x39   : > { %p52_p2 = scmp.gt.s32.totalorder %s51_s30, 0 }
  0x3b   : > { %p55_p4 = pnand %p54_p3, %p52_p2 }
  0x3c   : > { %v59_v5 = vstv (!%p55_p4), %s50_s29  ;;  %v62_v6 = vstv (!%p55_p4), %s51_s30  ;;  %v70_v7 = vshrl.u32 (!%p55_p4), %v26_v0, 7  ;;  %v67_v8 = vld [vmem:[#allocation2] sm:$0x3] (!%p55_p4)  ;;  %v524_v11 = vmov (!%p55_p4), 1966171168  }
  0x3d   : > { %58 = sbr.rel (%p55_p4) target bundleno = 74 (0x4a), region = 16  ;;  %vm60_vm1 = vcmp.ge.s32.totalorder (!%p55_p4), %v565_v1, %v59_v5  ;;  %vm61_vm2 = vcmp.ge.s32.totalorder (!%p55_p4), %v581_v4, %v59_v5  ;;  %vm63_vm3 = vcmp.lt.s32.totalorder (!%p55_p4), %v565_v1, %v62_v6  ;;  %vm64_vm4 = vcmp.lt.s32.totalorder (!%p55_p4), %v581_v4, %v62_v6 }
  0x3e   : > { %vm65_vm5 = vmand (!%p55_p4), %vm60_vm1, %vm63_vm3  ;;  %v71_v9 = vsub.s32 (!%p55_p4), 0, %v70_v7  ;;  %v75_v10 = vsub.s32 (!%p55_p4), 1, %v70_v7  ;;  %v85_v12 = vunpack.c.l.s4 (!%p55_p4), %v524_v11 }
  0x3f   : > { %vm66_vm6 = vmand (!%p55_p4), %vm61_vm2, %vm64_vm4 }
  0x40   : > { %v72_v13 = vrot.slane (!%p55_p4), %v67_v8, %v71_v9  ;;  %v76_v14 = vrot.slane (!%p55_p4), %v67_v8, %v75_v10  ;;  %v86_v15 = vunpack.c.0.s8 (!%p55_p4), %v85_v12 }
  0x42   : > { %v79_v16 = vsel (!%p55_p4), %vm65_vm5, 0.0, %v72_v13  ;;  %v80_v17 = vsel (!%p55_p4), %vm66_vm6, 0.0, %v76_v14  ;;  %v89_v18 = vsub.s32 (!%p55_p4), %v86_v15, %v70_v7 }
  0x43   : > { %v83_v19 = vcombine.low (!%p55_p4), %v79_v16, %v80_v17 }
  0x45   : > { %v90_v20 = vrot.slane %v83_v19, %v89_v18 }
  0x47   : > { %v97_v21 = vrot.slane %v90_v20, %v89_v18 }
  0x49   : > { %99 = vst.msk [vmem:[#allocation2] sm:$0x3] %vm568_vm0, %v97_v21 }
  0x4a PF: > { %s46_s2 = sadd.s32 1, %s506_s2  }
  0x4b   : > { %p45_p5 = scmp.ge.s32.totalorder %s46_s2, %s562_s28 }
  0x4d   :  { %48 = sbr.rel (!%p45_p5) target bundleno = 50 (0x32), region = 71 }
  0x54 PF:  { %s602_s5 = sld [smem:[#allocation6 + $0x1]] }
  0x5a   :  { %p405_p6 = scmp.le.s32.totalorder %s602_s5, 0 }
  0x5b   :  { %s605_s6 = smov (!%p405_p6), 0  }
  0x5c   :  { %390 = sbr.rel (%p405_p6) target bundleno = 134 (0x86), region = 76 }
  0x63 LB: > { %s109_s7 = sadd.s32 15, %s510_s6  ;;  %s510_s6 = sphi %s605_s6, %s106_s6  }
  0x64   : > { %s110_s8 = sld [smem:[#allocation4 + %s109_s7]] }
  0x65   : > { %s111_s9 = sld [smem:[#allocation5 + %s109_s7]] }
  0x6a   : > { %p114_p8 = scmp.lt.s32.totalorder %s110_s8, 256 }
  0x6b   : > { %p112_p7 = scmp.gt.s32.totalorder %s111_s9, 0 }
  0x6d   : > { %p115_p9 = pnand %p114_p8, %p112_p7 }
  0x6e   : > { %v119_v22 = vstv (!%p115_p9), %s110_s8  ;;  %v122_v23 = vstv (!%p115_p9), %s111_s9  ;;  %v131_v24 = vshrl.u32 (!%p115_p9), %v26_v0, 7  ;;  %v128_v25 = vld [vmem:[#allocation2 + $0x2] sm:$0x3] (!%p115_p9)  ;;  %v525_v28 = vmov (!%p115_p9), 1966171168  }
  0x6f   : > { %118 = sbr.rel (%p115_p9) target bundleno = 124 (0x7c), region = 27  ;;  %vm120_vm7 = vcmp.ge.s32.totalorder (!%p115_p9), %v565_v1, %v119_v22  ;;  %vm121_vm8 = vcmp.ge.s32.totalorder (!%p115_p9), %v581_v4, %v119_v22  ;;  %vm123_vm9 = vcmp.lt.s32.totalorder (!%p115_p9), %v565_v1, %v122_v23  ;;  %vm124_vm10 = vcmp.lt.s32.totalorder (!%p115_p9), %v581_v4, %v122_v23 }
  0x70   : > { %vm125_vm11 = vmand (!%p115_p9), %vm120_vm7, %vm123_vm9  ;;  %v132_v26 = vsub.s32 (!%p115_p9), 0, %v131_v24  ;;  %v136_v27 = vsub.s32 (!%p115_p9), 1, %v131_v24  ;;  %v146_v29 = vunpack.c.l.s4 (!%p115_p9), %v525_v28 }
  0x71   : > { %vm126_vm12 = vmand (!%p115_p9), %vm121_vm8, %vm124_vm10 }
  0x72   : > { %v133_v30 = vrot.slane (!%p115_p9), %v128_v25, %v132_v26  ;;  %v137_v31 = vrot.slane (!%p115_p9), %v128_v25, %v136_v27  ;;  %v147_v32 = vunpack.c.0.s8 (!%p115_p9), %v146_v29 }
  0x74   : > { %v140_v33 = vsel (!%p115_p9), %vm125_vm11, 0.0, %v133_v30  ;;  %v141_v34 = vsel (!%p115_p9), %vm126_vm12, 0.0, %v137_v31  ;;  %v150_v35 = vsub.s32 (!%p115_p9), %v147_v32, %v131_v24 }
  0x75   : > { %v144_v36 = vcombine.low (!%p115_p9), %v140_v33, %v141_v34 }
  0x77   : > { %v151_v37 = vrot.slane %v144_v36, %v150_v35 }
  0x79   : > { %v158_v38 = vrot.slane %v151_v37, %v150_v35 }
  0x7b   : > { %160 = vst.msk [vmem:[#allocation2 + $0x2] sm:$0x3] %vm568_vm0, %v158_v38 }
  0x7c PF: > { %s106_s6 = sadd.s32 1, %s510_s6  }
  0x7d   : > { %p105_p10 = scmp.ge.s32.totalorder %s106_s6, %s602_s5 }
  0x7f   :  { %108 = sbr.rel (!%p105_p10) target bundleno = 99 (0x63), region = 82 }
  0x86 PF:  { %s622_s10 = sld [smem:[#allocation6 + $0x2]] }
  0x8c   :  { %p407_p11 = scmp.le.s32.totalorder %s622_s10, 0 }
  0x8d   :  { %s625_s11 = smov (!%p407_p11), 0  }
  0x8e   :  { %395 = sbr.rel (%p407_p11) target bundleno = 184 (0xb8), region = 87 }
  0x95 LB: > { %s170_s12 = sadd.s32 30, %s514_s11  ;;  %s514_s11 = sphi %s625_s11, %s167_s11  }
  0x96   : > { %s171_s13 = sld [smem:[#allocation4 + %s170_s12]] }
  0x97   : > { %s172_s14 = sld [smem:[#allocation5 + %s170_s12]] }
  0x9c   : > { %p175_p13 = scmp.lt.s32.totalorder %s171_s13, 256 }
  0x9d   : > { %p173_p12 = scmp.gt.s32.totalorder %s172_s14, 0 }
  0x9f   : > { %p176_p0 = pnand %p175_p13, %p173_p12 }
  0xa0   : > { %v180_v39 = vstv (!%p176_p0), %s171_s13  ;;  %v183_v40 = vstv (!%p176_p0), %s172_s14  ;;  %v192_v41 = vshrl.u32 (!%p176_p0), %v26_v0, 7  ;;  %v189_v42 = vld [vmem:[#allocation2 + $0x4] sm:$0x3] (!%p176_p0)  ;;  %v526_v45 = vmov (!%p176_p0), 1966171168  }
  0xa1   : > { %179 = sbr.rel (%p176_p0) target bundleno = 174 (0xae), region = 38  ;;  %vm181_vm13 = vcmp.ge.s32.totalorder (!%p176_p0), %v565_v1, %v180_v39  ;;  %vm182_vm14 = vcmp.ge.s32.totalorder (!%p176_p0), %v581_v4, %v180_v39  ;;  %vm184_vm15 = vcmp.lt.s32.totalorder (!%p176_p0), %v565_v1, %v183_v40  ;;  %vm185_vm1 = vcmp.lt.s32.totalorder (!%p176_p0), %v581_v4, %v183_v40 }
  0xa2   : > { %vm186_vm2 = vmand (!%p176_p0), %vm181_vm13, %vm184_vm15  ;;  %v193_v43 = vsub.s32 (!%p176_p0), 0, %v192_v41  ;;  %v197_v44 = vsub.s32 (!%p176_p0), 1, %v192_v41  ;;  %v207_v46 = vunpack.c.l.s4 (!%p176_p0), %v526_v45 }
  0xa3   : > { %vm187_vm3 = vmand (!%p176_p0), %vm182_vm14, %vm185_vm1 }
  0xa4   : > { %v194_v47 = vrot.slane (!%p176_p0), %v189_v42, %v193_v43  ;;  %v198_v48 = vrot.slane (!%p176_p0), %v189_v42, %v197_v44  ;;  %v208_v49 = vunpack.c.0.s8 (!%p176_p0), %v207_v46 }
  0xa6   : > { %v201_v50 = vsel (!%p176_p0), %vm186_vm2, 0.0, %v194_v47  ;;  %v202_v51 = vsel (!%p176_p0), %vm187_vm3, 0.0, %v198_v48  ;;  %v211_v52 = vsub.s32 (!%p176_p0), %v208_v49, %v192_v41 }
  0xa7   : > { %v205_v53 = vcombine.low (!%p176_p0), %v201_v50, %v202_v51 }
  0xa9   : > { %v212_v54 = vrot.slane %v205_v53, %v211_v52 }
  0xab   : > { %v219_v55 = vrot.slane %v212_v54, %v211_v52 }
  0xad   : > { %221 = vst.msk [vmem:[#allocation2 + $0x4] sm:$0x3] %vm568_vm0, %v219_v55 }
  0xae PF: > { %s167_s11 = sadd.s32 1, %s514_s11  }
  0xaf   : > { %p166_p1 = scmp.ge.s32.totalorder %s167_s11, %s622_s10 }
  0xb1   :  { %169 = sbr.rel (!%p166_p1) target bundleno = 149 (0x95), region = 93 }
  0xb8 PF:  { %s642_s15 = sld [smem:[#allocation6 + $0x3]] }
  0xbe   :  { %p409_p2 = scmp.le.s32.totalorder %s642_s15, 0 }
  0xbf   :  { %s645_s16 = smov (!%p409_p2), 0  }
  0xc0   :  { %400 = sbr.rel (%p409_p2) target bundleno = 234 (0xea), region = 98 }
  0xc7 LB: > { %s231_s17 = sadd.s32 45, %s518_s16  ;;  %s518_s16 = sphi %s645_s16, %s228_s16  }
  0xc8   : > { %s232_s18 = sld [smem:[#allocation4 + %s231_s17]] }
  0xc9   : > { %s233_s19 = sld [smem:[#allocation5 + %s231_s17]] }
  0xce   : > { %p236_p4 = scmp.lt.s32.totalorder %s232_s18, 256 }
  0xcf   : > { %p234_p3 = scmp.gt.s32.totalorder %s233_s19, 0 }
  0xd1   : > { %p237_p5 = pnand %p236_p4, %p234_p3 }
  0xd2   : > { %v241_v56 = vstv (!%p237_p5), %s232_s18  ;;  %v244_v57 = vstv (!%p237_p5), %s233_s19  ;;  %v253_v58 = vshrl.u32 (!%p237_p5), %v26_v0, 7  ;;  %v250_v59 = vld [vmem:[#allocation2 + $0x6] sm:$0x3] (!%p237_p5)  ;;  %v527_v62 = vmov (!%p237_p5), 1966171168  }
  0xd3   : > { %240 = sbr.rel (%p237_p5) target bundleno = 224 (0xe0), region = 49  ;;  %vm242_vm4 = vcmp.ge.s32.totalorder (!%p237_p5), %v565_v1, %v241_v56  ;;  %vm243_vm5 = vcmp.ge.s32.totalorder (!%p237_p5), %v581_v4, %v241_v56  ;;  %vm245_vm6 = vcmp.lt.s32.totalorder (!%p237_p5), %v565_v1, %v244_v57  ;;  %vm246_vm7 = vcmp.lt.s32.totalorder (!%p237_p5), %v581_v4, %v244_v57 }
  0xd4   : > { %vm247_vm8 = vmand (!%p237_p5), %vm242_vm4, %vm245_vm6  ;;  %v254_v60 = vsub.s32 (!%p237_p5), 0, %v253_v58  ;;  %v258_v61 = vsub.s32 (!%p237_p5), 1, %v253_v58  ;;  %v268_v63 = vunpack.c.l.s4 (!%p237_p5), %v527_v62 }
  0xd5   : > { %vm248_vm9 = vmand (!%p237_p5), %vm243_vm5, %vm246_vm7 }
  0xd6   : > { %v255_v3 = vrot.slane (!%p237_p5), %v250_v59, %v254_v60  ;;  %v259_v5 = vrot.slane (!%p237_p5), %v250_v59, %v258_v61  ;;  %v269_v6 = vunpack.c.0.s8 (!%p237_p5), %v268_v63 }
  0xd8   : > { %v262_v7 = vsel (!%p237_p5), %vm247_vm8, 0.0, %v255_v3  ;;  %v263_v8 = vsel (!%p237_p5), %vm248_vm9, 0.0, %v259_v5  ;;  %v272_v9 = vsub.s32 (!%p237_p5), %v269_v6, %v253_v58 }
  0xd9   : > { %v266_v10 = vcombine.low (!%p237_p5), %v262_v7, %v263_v8 }
  0xdb   : > { %v273_v11 = vrot.slane %v266_v10, %v272_v9 }
  0xdd   : > { %v280_v12 = vrot.slane %v273_v11, %v272_v9 }
  0xdf   : > { %282 = vst.msk [vmem:[#allocation2 + $0x6] sm:$0x3] %vm568_vm0, %v280_v12 }
  0xe0 PF: > { %s228_s16 = sadd.s32 1, %s518_s16  }
  0xe1   : > { %p227_p6 = scmp.ge.s32.totalorder %s228_s16, %s642_s15 }
  0xe3   :  { %230 = sbr.rel (!%p227_p6) target bundleno = 199 (0xc7), region = 104 }
  0xea PF:  { %v308_v13 = vshrl.u32 %v26_v0, 7  ;;  %v283_v14 = vld [vmem:[%s760_s3] sm:$0xff]  ;;  %v284_v16 = vld [vmem:[%s760_s3 + $0x8] sm:$0xff]  ;;  %v285_v17 = vld [vmem:[%s760_s3 + $0x10] sm:$0xf] }
  0xeb   :  { %v299_v15 = vld [vmem:[#allocation2] sm:$0x3]  ;;  %v286_v1 = vld [vmem:[%s760_s3 + $0x18] sm:$0xf]  ;;  %v300_v0 = vld [vmem:[#allocation2 + $0x2] sm:$0x3] }
  0xec   :  { %v309_v18 = vsub.s32 0, %v308_v13  ;;  %v313_v19 = vsub.s32 1, %v308_v13  ;;  %v287_v2 = vld [vmem:[%s760_s3 + $0x20] sm:$0xff]  ;;  %v288_v4 = vld [vmem:[%s760_s3 + $0x28] sm:$0xff]  ;;  %v289_v25 = vld [vmem:[%s760_s3 + $0x30] sm:$0xf] }
  0xed   :  { %v301_v20 = vld [vmem:[#allocation2 + $0x4] sm:$0x3]  ;;  %v290_v26 = vld [vmem:[%s760_s3 + $0x38] sm:$0xf]  ;;  %v292_v29 = vld [vmem:[%s760_s3 + $0x48] sm:$0xff] }
  0xee   :  { %v310_v21 = vrot.slane %v299_v15, %v309_v18  ;;  %v314_v22 = vrot.slane %v299_v15, %v313_v19  ;;  %v318_v23 = vrot.slane %v300_v0, %v309_v18  ;;  %v322_v24 = vrot.slane %v300_v0, %v313_v19  ;;  %v291_v27 = vld [vmem:[%s760_s3 + $0x40] sm:$0xff]  ;;  %v293_v31 = vld [vmem:[%s760_s3 + $0x50] sm:$0xf]  ;;  %v294_v32 = vld [vmem:[%s760_s3 + $0x58] sm:$0xf] }
  0xef   :  { %v326_v28 = vrot.slane %v301_v20, %v309_v18  ;;  %v330_v30 = vrot.slane %v301_v20, %v313_v19  ;;  %v302_v37 = vld [vmem:[#allocation2 + $0x6] sm:$0x3]  ;;  %v296_v47 = vld [vmem:[%s760_s3 + $0x68] sm:$0xff]  ;;  %v297_v48 = vld [vmem:[%s760_s3 + $0x70] sm:$0xf] }
  0xf0   :  { %v347_v33 = vmul.f32 %v310_v21, %v283_v14  ;;  %v348_v34 = vmul.f32 %v314_v22, %v284_v16  ;;  %v349_v35 = vmul.f32 %v310_v21, %v285_v17  ;;  %v350_v36 = vmul.f32 %v314_v22, %v286_v1  ;;  %v295_v42 = vld [vmem:[%s760_s3 + $0x60] sm:$0xff]  ;;  %v298_v49 = vld [vmem:[%s760_s3 + $0x78] sm:$0xf] }
  0xf1   :  { %v351_v38 = vmul.f32 %v318_v23, %v287_v2  ;;  %v352_v39 = vmul.f32 %v322_v24, %v288_v4  ;;  %v353_v40 = vmul.f32 %v318_v23, %v289_v25  ;;  %v354_v41 = vmul.f32 %v322_v24, %v290_v26 }
  0xf2   :  { %363 = vst [vmem:[%s761_s4] sm:$0xff] %v347_v33  ;;  %364 = vst [vmem:[%s761_s4 + $0x8] sm:$0xff] %v348_v34  ;;  %v355_v43 = vmul.f32 %v326_v28, %v291_v27  ;;  %v356_v44 = vmul.f32 %v330_v30, %v292_v29  ;;  %v357_v45 = vmul.f32 %v326_v28, %v293_v31 }
  0xf3   :  { %365 = vst [vmem:[%s761_s4 + $0x10] sm:$0xf] %v349_v35  ;;  %366 = vst [vmem:[%s761_s4 + $0x18] sm:$0xf] %v350_v36  ;;  %v358_v46 = vmul.f32 %v330_v30, %v294_v32  ;;  %v334_v50 = vrot.slane %v302_v37, %v309_v18  ;;  %v338_v51 = vrot.slane %v302_v37, %v313_v19 }
  0xf4   :  { %367 = vst [vmem:[%s761_s4 + $0x20] sm:$0xff] %v351_v38  ;;  %368 = vst [vmem:[%s761_s4 + $0x28] sm:$0xff] %v352_v39 }
  0xf5   :  { %369 = vst [vmem:[%s761_s4 + $0x30] sm:$0xf] %v353_v40  ;;  %370 = vst [vmem:[%s761_s4 + $0x38] sm:$0xf] %v354_v41  ;;  %v359_v52 = vmul.f32 %v334_v50, %v295_v42  ;;  %v360_v53 = vmul.f32 %v338_v51, %v296_v47  ;;  %v361_v54 = vmul.f32 %v334_v50, %v297_v48 }
  0xf6   :  { %371 = vst [vmem:[%s761_s4 + $0x40] sm:$0xff] %v355_v43  ;;  %372 = vst [vmem:[%s761_s4 + $0x48] sm:$0xff] %v356_v44  ;;  %v362_v55 = vmul.f32 %v338_v51, %v298_v49 }
  0xf7   :  { %373 = vst [vmem:[%s761_s4 + $0x50] sm:$0xf] %v357_v45  ;;  %374 = vst [vmem:[%s761_s4 + $0x58] sm:$0xf] %v358_v46 }
  0xf8   :  { %375 = vst [vmem:[%s761_s4 + $0x60] sm:$0xff] %v359_v52  ;;  %376 = vst [vmem:[%s761_s4 + $0x68] sm:$0xff] %v360_v53 }
  0xf9   :  { %377 = vst [vmem:[%s761_s4 + $0x70] sm:$0xf] %v361_v54  ;;  %378 = vst [vmem:[%s761_s4 + $0x78] sm:$0xf] %v362_v55 }

</bundles_post_ra>
